<compile_context>
chip_gen: v7x
topology: tpu7x:2x2x1
jax: 0.10.0
libtpu: 0.0.40
codegen_flags: <defaults>
</compile_context>

<pallas_src>
import functools

import jax
import jax.numpy as jnp
from jax import lax
from jax.experimental import pallas as pl
from jax.experimental.pallas import tpu as pltpu

_NEG_INF = -1e30          # finite "minus infinity"; masked p is zeroed explicitly
_VMEM_LIMIT = 64 * 1024 * 1024   # safe on v7x (64 MiB), above 16/32 MiB defaults


# ----------------------------------------------------------------------------
# Kernel 1: fused QKV projection + rotary embedding, tiled per kv-head group
# ----------------------------------------------------------------------------
def _qkv_rope_kernel(x_ref, wq_ref, wk_ref, wv_ref, cos_ref, sin_ref,
                     q_ref, k_ref, v_ref, *, repeats, head_dim):
    half = head_dim // 2
    x = x_ref[...]                                   # (tm, dim)
    cos = cos_ref[...]                               # (tm, head_dim) f32
    sin = sin_ref[...]                               # (tm, head_dim) f32
    # Fold the rotate-half sign into sin once per step: rot(t) = roll(t,half)*sign
    lane = lax.broadcasted_iota(jnp.int32, sin.shape, 1)
    sin_signed = jnp.where(lane < half, -sin, sin)

    def rope(t):                                     # t: (tm, head_dim) f32
        return t * cos + pltpu.roll(t, half, axis=1) * sin_signed

    # Plain (m,k)x(k,n) matmuls (weights pre-transposed to (in, out) host-side).
    yq = jnp.dot(x, wq_ref[...], preferred_element_type=jnp.float32)
    for r in range(repeats):                         # small static unroll
        q_ref[0, r] = rope(yq[:, r * head_dim:(r + 1) * head_dim]
                           ).astype(q_ref.dtype)
    yk = jnp.dot(x, wk_ref[...], preferred_element_type=jnp.float32)
    k_ref[0] = rope(yk).astype(k_ref.dtype)
    v_ref[0] = jnp.dot(x, wv_ref[...],
                       preferred_element_type=jnp.float32).astype(v_ref.dtype)


# ----------------------------------------------------------------------------
# Kernel 2: flash attention (GQA + sliding-window causal), window-restricted
#           kv grid, online softmax kept resident in VMEM across the kv axis
# ----------------------------------------------------------------------------
def _flash_attn_kernel(q_ref, k_ref, v_ref, o_ref, m_scr, l_scr, acc_scr,
                       *, scale, tq, tk, window, kv_steps, repeats, head_dim):
    qi = pl.program_id(1)
    ki = pl.program_id(2)

    @pl.when(ki == 0)
    def _init():
        m_scr[...] = jnp.full_like(m_scr, _NEG_INF)
        l_scr[...] = jnp.zeros_like(l_scr)
        acc_scr[...] = jnp.zeros_like(acc_scr)

    q_start = qi * tq
    hi_blk = (q_start + tq - 1) // tk                # diagonal kv tile
    blk = hi_blk - (kv_steps - 1) + ki               # true (unclamped) kv tile
    k_start = blk * tk

    # Tile overlaps this q tile's causal sliding window?  (Surplus steps whose
    # unclamped block index is negative are skipped even though the index_map
    # clamped them to block 0 -- prevents double counting.)
    relevant = jnp.logical_and(
        blk >= 0, k_start + (tk - 1) >= q_start - (window - 1))
    # Tile fully inside the window (no per-element masking needed)?
    interior = jnp.logical_and(
        blk >= 0,
        jnp.logical_and(k_start + (tk - 1) <= q_start,
                        q_start + (tq - 1) - k_start <= window - 1))

    def update(masked):
        q = q_ref[0].reshape(repeats * tq, head_dim)       # free layout merge
        k = k_ref[0]                                        # (tk, head_dim)
        v = v_ref[0]                                        # (tk, head_dim)
        s = lax.dot_general(q, k, (((1,), (1,)), ((), ())),
                            preferred_element_type=jnp.float32) * scale
        if masked:
            q_pos = q_start + lax.broadcasted_iota(
                jnp.int32, (repeats, tq, tk), 1)
            k_pos = k_start + lax.broadcasted_iota(
                jnp.int32, (repeats, tq, tk), 2)
            mask = jnp.logical_and(k_pos <= q_pos, q_pos - k_pos < window)
            mask = mask.reshape(repeats * tq, tk)
            s = jnp.where(mask, s, _NEG_INF)
        m_prev = m_scr[...]
        m_new = jnp.maximum(m_prev, jnp.max(s, axis=-1, keepdims=True))
        alpha = jnp.exp(m_prev - m_new)
        p = jnp.exp(s - m_new)
        if masked:
            p = jnp.where(mask, p, 0.0)      # exact: no garbage from -1e30 rows
        l_scr[...] = alpha * l_scr[...] + jnp.sum(p, axis=-1, keepdims=True)
        acc_scr[...] = alpha * acc_scr[...] + lax.dot_general(
            p.astype(v.dtype), v, (((1,), (0,)), ((), ())),
            preferred_element_type=jnp.float32)
        m_scr[...] = m_new

    @pl.when(interior)
    def _fast():
        update(masked=False)

    @pl.when(jnp.logical_and(relevant, jnp.logical_not(interior)))
    def _edge():
        update(masked=True)

    @pl.when(ki == kv_steps - 1)             # diagonal tile: always relevant
    def _finalize():
        out = acc_scr[...] * pl.reciprocal(l_scr[...], approx=False)
        o_ref[0] = out.reshape(repeats, tq, head_dim).astype(o_ref.dtype)


# ----------------------------------------------------------------------------
# Kernel 3: output projection (wo), contraction over kv-head groups (P3)
# ----------------------------------------------------------------------------
def _out_proj_kernel(a_ref, wo_ref, o_ref, acc_ref, *, repeats, head_dim):
    g = pl.program_id(1)

    @pl.when(g == 0)
    def _init():
        acc_ref[...] = jnp.zeros_like(acc_ref)

    a = a_ref[0]                                   # (repeats, tm, head_dim)
    part = None
    for r in range(repeats):                       # small static unroll
        c = jnp.dot(a[r], wo_ref[r * head_dim:(r + 1) * head_dim, :],
                    preferred_element_type=jnp.float32)
        part = c if part is None else part + c
    acc_ref[...] += part

    @pl.when(g == pl.num_programs(1) - 1)
    def _finalize():
        o_ref[...] = acc_ref[...].astype(o_ref.dtype)


# ----------------------------------------------------------------------------
# Wrapper
# ----------------------------------------------------------------------------
def attention(x, wq, wk, wv, wo, cos_half, sin_half, *,
              n_heads, n_kv_heads, head_dim, sliding_window,
              block_m=256, block_q=256, block_kv=256):
    """x: (seq, dim). wq/wk/wv/wo in PyTorch nn.Linear (out, in) layout."""
    seq, dim = x.shape
    repeats = n_heads // n_kv_heads
    q_out = n_heads * head_dim
    kv_out = n_kv_heads * head_dim
    assert wq.shape == (q_out, dim) and wk.shape == (kv_out, dim)
    assert wv.shape == (kv_out, dim) and wo.shape == (dim, q_out)
    dt_bytes = x.dtype.itemsize

    # One-time weight prep (fold into the checkpoint in a real model):
    #  - interleaved-pair RoPE -> half-rotation RoPE row permutation (dot-product
    #    invariant because q and k get the same permutation),
    #  - transpose to (in, out) so every in-kernel matmul is plain (m,k)x(k,n).
    perm = jnp.concatenate([jnp.arange(0, head_dim, 2),
                            jnp.arange(1, head_dim, 2)])
    wq_t = wq.reshape(n_heads, head_dim, dim)[:, perm, :].reshape(q_out, dim).T
    wk_t = wk.reshape(n_kv_heads, head_dim, dim)[:, perm, :].reshape(kv_out, dim).T
    wv_t = wv.T                                             # (dim, kv_out)
    wo_t = wo.T                                             # (q_out, dim)

    cos = jnp.concatenate([cos_half, cos_half], axis=-1).astype(jnp.float32)
    sin = jnp.concatenate([sin_half, sin_half], axis=-1).astype(jnp.float32)

    def pick(t, s):
        t = min(t, s)
        assert s % t == 0 and (t == s or t % 8 == 0)
        return t
    tm = pick(block_m, seq)
    tq = pick(block_q, seq)
    tk = pick(block_kv, seq)
    n_q_tiles = seq // tq
    n_k_tiles = seq // tk

    # Window-restricted kv axis: max #kv tiles any q tile can touch.
    def _span(qi):
        q0 = qi * tq
        lo = max(0, q0 - sliding_window + 1) // tk
        hi = (q0 + tq - 1) // tk
        return hi - lo + 1
    kv_steps = max(_span(qi) for qi in range(n_q_tiles))

    # ---- kernel 1: QKV + RoPE (weights tiled per kv-head group) ---------------
    q_hm, k_hm, v_hm = pl.pallas_call(
        functools.partial(_qkv_rope_kernel, repeats=repeats, head_dim=head_dim),
        out_shape=(
            jax.ShapeDtypeStruct((n_kv_heads, repeats, seq, head_dim), x.dtype),
            jax.ShapeDtypeStruct((n_kv_heads, seq, head_dim), x.dtype),
            jax.ShapeDtypeStruct((n_kv_heads, seq, head_dim), x.dtype)),
        grid_spec=pltpu.PrefetchScalarGridSpec(
            num_scalar_prefetch=0,
            grid=(n_kv_heads, seq // tm),        # group outer -> weights resident
            in_specs=[
                pl.BlockSpec((tm, dim), lambda g, i: (i, 0)),
                pl.BlockSpec((dim, repeats * head_dim), lambda g, i: (0, g)),
                pl.BlockSpec((dim, head_dim), lambda g, i: (0, g)),
                pl.BlockSpec((dim, head_dim), lambda g, i: (0, g)),
                pl.BlockSpec((tm, head_dim), lambda g, i: (i, 0)),
                pl.BlockSpec((tm, head_dim), lambda g, i: (i, 0)),
            ],
            out_specs=(
                pl.BlockSpec((1, repeats, tm, head_dim),
                             lambda g, i: (g, 0, i, 0)),
                pl.BlockSpec((1, tm, head_dim), lambda g, i: (g, i, 0)),
                pl.BlockSpec((1, tm, head_dim), lambda g, i: (g, i, 0)),
            )),
        compiler_params=pltpu.CompilerParams(
            dimension_semantics=("parallel", "parallel"),
            vmem_limit_bytes=_VMEM_LIMIT),
        cost_estimate=pl.CostEstimate(
            flops=2 * seq * dim * (q_out + 2 * kv_out),
            transcendentals=0,
            bytes_accessed=(n_kv_heads * x.size + wq.size + wk.size + wv.size
                            + seq * (q_out + 2 * kv_out)) * dt_bytes),
    )(x, wq_t, wk_t, wv_t, cos, sin)

    # ---- kernel 2: flash attention (window-restricted kv grid, GQA blocked) ---
    scale = head_dim ** -0.5

    def _kv_map(g, qi, ki):
        hi = (qi * tq + tq - 1) // tk
        blk = hi - (kv_steps - 1) + ki
        return (g, jnp.maximum(blk, 0), 0)       # clamp; kernel skips surplus

    attn_hm = pl.pallas_call(
        functools.partial(_flash_attn_kernel, scale=scale, tq=tq, tk=tk,
                          window=sliding_window, kv_steps=kv_steps,
                          repeats=repeats, head_dim=head_dim),
        out_shape=jax.ShapeDtypeStruct((n_kv_heads, repeats, seq, head_dim),
                                       x.dtype),
        grid_spec=pltpu.PrefetchScalarGridSpec(
            num_scalar_prefetch=0,
            grid=(n_kv_heads, n_q_tiles, kv_steps),
            in_specs=[
                pl.BlockSpec((1, repeats, tq, head_dim),
                             lambda g, qi, ki: (g, 0, qi, 0)),
                pl.BlockSpec((1, tk, head_dim), _kv_map),
                pl.BlockSpec((1, tk, head_dim), _kv_map),
            ],
            out_specs=pl.BlockSpec((1, repeats, tq, head_dim),
                                   lambda g, qi, ki: (g, 0, qi, 0)),
            scratch_shapes=[pltpu.VMEM((repeats * tq, 1), jnp.float32),
                            pltpu.VMEM((repeats * tq, 1), jnp.float32),
                            pltpu.VMEM((repeats * tq, head_dim), jnp.float32)]),
        compiler_params=pltpu.CompilerParams(
            dimension_semantics=("parallel", "parallel", "arbitrary"),
            vmem_limit_bytes=_VMEM_LIMIT),
        cost_estimate=pl.CostEstimate(     # windowed, not dense seq^2
            flops=4 * n_heads * seq * kv_steps * tk * head_dim,
            transcendentals=n_heads * seq * kv_steps * tk,
            bytes_accessed=(2 * q_hm.size
                            + 2 * n_kv_heads * n_q_tiles * kv_steps * tk
                            * head_dim) * dt_bytes),
    )(q_hm, k_hm, v_hm)

    # ---- kernel 3: output projection, wo tiled per group, f32 accumulator -----
    out = pl.pallas_call(
        functools.partial(_out_proj_kernel, repeats=repeats, head_dim=head_dim),
        out_shape=jax.ShapeDtypeStruct((seq, dim), x.dtype),
        grid_spec=pltpu.PrefetchScalarGridSpec(
            num_scalar_prefetch=0,
            grid=(seq // tm, n_kv_heads),        # contraction (group) axis last
            in_specs=[
                pl.BlockSpec((1, repeats, tm, head_dim),
                             lambda i, g: (g, 0, i, 0)),
                pl.BlockSpec((repeats * head_dim, dim), lambda i, g: (g, 0)),
            ],
            out_specs=pl.BlockSpec((tm, dim), lambda i, g: (i, 0)),
            scratch_shapes=[pltpu.VMEM((tm, dim), jnp.float32)]),
        compiler_params=pltpu.CompilerParams(
            dimension_semantics=("parallel", "arbitrary"),
            vmem_limit_bytes=_VMEM_LIMIT),
        cost_estimate=pl.CostEstimate(
            flops=2 * seq * q_out * dim, transcendentals=0,
            bytes_accessed=(attn_hm.size + (seq // tm) * wo.size
                            + seq * dim) * dt_bytes),
    )(attn_hm, wo_t)
    return out


# ----------------------------------------------------------------------------
# Pure-JAX reference (mirrors the PyTorch module, cache=None path)
# ----------------------------------------------------------------------------
def reference_attention(x, wq, wk, wv, wo, cos_half, sin_half, *,
                        n_heads, n_kv_heads, head_dim, window):
    seq, _ = x.shape
    repeats = n_heads // n_kv_heads
    xq = (x @ wq.T).reshape(seq, n_heads, head_dim)
    xk = (x @ wk.T).reshape(seq, n_kv_heads, head_dim)
    xv = (x @ wv.T).reshape(seq, n_kv_heads, head_dim)

    def rope_interleaved(t):          # mistral apply_rotary_emb (complex pairs)
        t2 = t.reshape(*t.shape[:-1], head_dim // 2, 2)
        tr, ti = t2[..., 0], t2[..., 1]
        c = cos_half[:, None, :]
        s = sin_half[:, None, :]
        return jnp.stack([tr * c - ti * s, tr * s + ti * c],
                         axis=-1).reshape(t.shape)

    xq = rope_interleaved(xq)
    xk = rope_interleaved(xk)
    key = jnp.repeat(xk, repeats, axis=1)        # repeat_kv (repeat_interleave)
    val = jnp.repeat(xv, repeats, axis=1)

    scale = head_dim ** -0.5
    scores = jnp.einsum('qhd,khd->hqk', xq, key) * scale
    qpos = jnp.arange(seq)[:, None]
    kpos = jnp.arange(seq)[None, :]
    mask = (kpos <= qpos) & (qpos - kpos < window)
    scores = jnp.where(mask[None], scores, -jnp.inf)
    p = jax.nn.softmax(scores, axis=-1)
    out = jnp.einsum('hqk,khd->qhd', p, val)
    return out.reshape(seq, n_heads * head_dim) @ wo.T


if __name__ == "__main__":
    # Small Mistral-like config (head_dim=128 as in the real model).
    seq, dim = 128, 128
    n_heads, n_kv_heads, head_dim = 4, 2, 128
    sliding_window = 40
    theta = 10000.0

    key = jax.random.PRNGKey(0)
    kx, kq, kk, kv, ko = jax.random.split(key, 5)
    x = jax.random.normal(kx, (seq, dim), dtype=jnp.float32)
    wq = jax.random.normal(kq, (n_heads * head_dim, dim), jnp.float32) * 0.05
    wk = jax.random.normal(kk, (n_kv_heads * head_dim, dim), jnp.float32) * 0.05
    wv = jax.random.normal(kv, (n_kv_heads * head_dim, dim), jnp.float32) * 0.05
    wo = jax.random.normal(ko, (dim, n_heads * head_dim), jnp.float32) * 0.05

    inv_freq = 1.0 / (theta ** (jnp.arange(0, head_dim, 2, dtype=jnp.float32)
                                / head_dim))
    freqs = jnp.outer(jnp.arange(seq, dtype=jnp.float32), inv_freq)
    cos_half, sin_half = jnp.cos(freqs), jnp.sin(freqs)

    # bf16 storage for weights/activations -> full-rate MXU, f32 accumulation.
    xb = x.astype(jnp.bfloat16)
    wqb, wkb, wvb, wob = (w.astype(jnp.bfloat16) for w in (wq, wk, wv, wo))

    out = attention(xb, wqb, wkb, wvb, wob, cos_half, sin_half,
                    n_heads=n_heads, n_kv_heads=n_kv_heads, head_dim=head_dim,
                    sliding_window=sliding_window,
                    block_m=32, block_q=16, block_kv=16)   # small demo tiles
    jax.block_until_ready(out)

    ref = reference_attention(
        xb.astype(jnp.float32), wqb.astype(jnp.float32),
        wkb.astype(jnp.float32), wvb.astype(jnp.float32),
        wob.astype(jnp.float32), cos_half, sin_half,
        n_heads=n_heads, n_kv_heads=n_kv_heads, head_dim=head_dim,
        window=sliding_window)

    assert out.shape == (seq, dim)
    err = jnp.max(jnp.abs(out.astype(jnp.float32) - ref))
    assert err < 3e-2, f"max abs err {err}"
    print("KERNEL_OK")
</pallas_src>

<mosaic_0001>
module attributes {stable_mosaic.version = 11 : i64} {
  func.func @_qkv_rope_kernel(%arg0: i32, %arg1: i32, %arg2: memref<32x128xbf16, #tpu.memory_space<vmem>>, %arg3: memref<128x256xbf16, #tpu.memory_space<vmem>>, %arg4: memref<128x128xbf16, #tpu.memory_space<vmem>>, %arg5: memref<128x128xbf16, #tpu.memory_space<vmem>>, %arg6: memref<32x128xf32, #tpu.memory_space<vmem>>, %arg7: memref<32x128xf32, #tpu.memory_space<vmem>>, %arg8: memref<1x2x32x128xbf16, #tpu.memory_space<vmem>>, %arg9: memref<1x32x128xbf16, #tpu.memory_space<vmem>>, %arg10: memref<1x32x128xbf16, #tpu.memory_space<vmem>>) attributes {dimension_semantics = [#tpu.dimension_semantics<parallel>, #tpu.dimension_semantics<parallel>], iteration_bounds = array<i64: 2, 4>, scalar_prefetch = 0 : i64, scratch_operands = 0 : i64, tpu.core_type = #tpu.core_type<tc>, window_params = [{transform_indices = @transform_0, window_bounds = array<i64: 32, 128>}, {transform_indices = @transform_1, window_bounds = array<i64: 128, 256>}, {transform_indices = @transform_2, window_bounds = array<i64: 128, 128>}, {transform_indices = @transform_3, window_bounds = array<i64: 128, 128>}, {transform_indices = @transform_4, window_bounds = array<i64: 32, 128>}, {transform_indices = @transform_5, window_bounds = array<i64: 32, 128>}, {transform_indices = @transform_6, window_bounds = array<i64: 1, 2, 32, 128>}, {transform_indices = @transform_7, window_bounds = array<i64: 1, 32, 128>}, {transform_indices = @transform_8, window_bounds = array<i64: 1, 32, 128>}]} {
    %c0 = arith.constant 0 : index
    %c0_0 = arith.constant 0 : index
    %0 = vector.load %arg2[%c0, %c0_0] : memref<32x128xbf16, #tpu.memory_space<vmem>>, vector<32x128xbf16>
    %c0_1 = arith.constant 0 : index
    %c0_2 = arith.constant 0 : index
    %1 = vector.load %arg6[%c0_1, %c0_2] : memref<32x128xf32, #tpu.memory_space<vmem>>, vector<32x128xf32>
    %c0_3 = arith.constant 0 : index
    %c0_4 = arith.constant 0 : index
    %2 = vector.load %arg7[%c0_3, %c0_4] : memref<32x128xf32, #tpu.memory_space<vmem>>, vector<32x128xf32>
    %3 = tpu.iota {dimensions = array<i32: 1>} : vector<32x128xi32>
    %c64_i32 = arith.constant 64 : i32
    %4 = vector.broadcast %c64_i32 : i32 to vector<32x128xi32>
    %5 = arith.cmpi slt, %3, %4 : vector<32x128xi32>
    %cst = arith.constant 0.000000e+00 : f32
    %6 = vector.broadcast %cst : f32 to vector<32x128xf32>
    %7 = arith.subf %6, %2 : vector<32x128xf32>
    %8 = arith.select %5, %7, %2 : vector<32x128xi1>, vector<32x128xf32>
    %c0_5 = arith.constant 0 : index
    %c0_6 = arith.constant 0 : index
    %9 = vector.load %arg3[%c0_5, %c0_6] : memref<128x256xbf16, #tpu.memory_space<vmem>>, vector<128x256xbf16>
    %cst_7 = arith.constant dense<0.000000e+00> : vector<32x256xf32>
    %10 = tpu.matmul %0, %9, %cst_7 {dimension_numbers = #tpu.dot_dimension_numbers<[1], [0], [0], [1], [0, 0, 1, 1], [], []>} : vector<32x128xbf16>, vector<128x256xbf16>, vector<32x256xf32> -> vector<32x256xf32>
    %11 = vector.extract_strided_slice %10 {offsets = [0, 0], sizes = [32, 128], strides = [1, 1]} : vector<32x256xf32> to vector<32x128xf32>
    %12 = arith.mulf %11, %1 : vector<32x128xf32>
    %c64_i32_8 = arith.constant 64 : i32
    %13 = tpu.dynamic_rotate %11 by %c64_i32_8 dim 1 : vector<32x128xf32>, i32 -> vector<32x128xf32>
    %14 = arith.mulf %13, %8 : vector<32x128xf32>
    %15 = arith.addf %12, %14 : vector<32x128xf32>
    %16 = arith.truncf %15 : vector<32x128xf32> to vector<32x128xbf16>
    %c0_9 = arith.constant 0 : index
    %c0_10 = arith.constant 0 : index
    %c0_11 = arith.constant 0 : index
    %c0_12 = arith.constant 0 : index
    %17 = vector.load %arg8[%c0_9, %c0_10, %c0_11, %c0_12] : memref<1x2x32x128xbf16, #tpu.memory_space<vmem>>, vector<1x1x32x128xbf16>
    %18 = vector.shape_cast %17 : vector<1x1x32x128xbf16> to vector<32x128xbf16>
    %19 = vector.shape_cast %16 : vector<32x128xbf16> to vector<1x1x32x128xbf16>
    tpu.vector_store %arg8[%c0_9, %c0_10, %c0_11, %c0_12], %19 {strides = array<i32>} : memref<1x2x32x128xbf16, #tpu.memory_space<vmem>>, vector<1x1x32x128xbf16>,
    %20 = vector.extract_strided_slice %10 {offsets = [0, 128], sizes = [32, 128], strides = [1, 1]} : vector<32x256xf32> to vector<32x128xf32>
    %21 = arith.mulf %20, %1 : vector<32x128xf32>
    %c64_i32_13 = arith.constant 64 : i32
    %22 = tpu.dynamic_rotate %20 by %c64_i32_13 dim 1 : vector<32x128xf32>, i32 -> vector<32x128xf32>
    %23 = arith.mulf %22, %8 : vector<32x128xf32>
    %24 = arith.addf %21, %23 : vector<32x128xf32>
    %25 = arith.truncf %24 : vector<32x128xf32> to vector<32x128xbf16>
    %c0_14 = arith.constant 0 : index
    %c1 = arith.constant 1 : index
    %c0_15 = arith.constant 0 : index
    %c0_16 = arith.constant 0 : index
    %26 = vector.load %arg8[%c0_14, %c1, %c0_15, %c0_16] : memref<1x2x32x128xbf16, #tpu.memory_space<vmem>>, vector<1x1x32x128xbf16>
    %27 = vector.shape_cast %26 : vector<1x1x32x128xbf16> to vector<32x128xbf16>
    %28 = vector.shape_cast %25 : vector<32x128xbf16> to vector<1x1x32x128xbf16>
    tpu.vector_store %arg8[%c0_14, %c1, %c0_15, %c0_16], %28 {strides = array<i32>} : memref<1x2x32x128xbf16, #tpu.memory_space<vmem>>, vector<1x1x32x128xbf16>,
    %c0_17 = arith.constant 0 : index
    %c0_18 = arith.constant 0 : index
    %29 = vector.load %arg4[%c0_17, %c0_18] : memref<128x128xbf16, #tpu.memory_space<vmem>>, vector<128x128xbf16>
    %cst_19 = arith.constant dense<0.000000e+00> : vector<32x128xf32>
    %30 = tpu.matmul %0, %29, %cst_19 {dimension_numbers = #tpu.dot_dimension_numbers<[1], [0], [0], [1], [0, 0, 1, 1], [], []>} : vector<32x128xbf16>, vector<128x128xbf16>, vector<32x128xf32> -> vector<32x128xf32>
    %31 = arith.mulf %30, %1 : vector<32x128xf32>
    %c64_i32_20 = arith.constant 64 : i32
    %32 = tpu.dynamic_rotate %30 by %c64_i32_20 dim 1 : vector<32x128xf32>, i32 -> vector<32x128xf32>
    %33 = arith.mulf %32, %8 : vector<32x128xf32>
    %34 = arith.addf %31, %33 : vector<32x128xf32>
    %35 = arith.truncf %34 : vector<32x128xf32> to vector<32x128xbf16>
    %c0_21 = arith.constant 0 : index
    %c0_22 = arith.constant 0 : index
    %c0_23 = arith.constant 0 : index
    %36 = vector.load %arg9[%c0_21, %c0_22, %c0_23] : memref<1x32x128xbf16, #tpu.memory_space<vmem>>, vector<1x32x128xbf16>
    %37 = vector.shape_cast %36 : vector<1x32x128xbf16> to vector<32x128xbf16>
    %38 = vector.shape_cast %35 : vector<32x128xbf16> to vector<1x32x128xbf16>
    tpu.vector_store %arg9[%c0_21, %c0_22, %c0_23], %38 {strides = array<i32>} : memref<1x32x128xbf16, #tpu.memory_space<vmem>>, vector<1x32x128xbf16>,
    %c0_24 = arith.constant 0 : index
    %c0_25 = arith.constant 0 : index
    %39 = vector.load %arg5[%c0_24, %c0_25] : memref<128x128xbf16, #tpu.memory_space<vmem>>, vector<128x128xbf16>
    %cst_26 = arith.constant dense<0.000000e+00> : vector<32x128xf32>
    %40 = tpu.matmul %0, %39, %cst_26 {dimension_numbers = #tpu.dot_dimension_numbers<[1], [0], [0], [1], [0, 0, 1, 1], [], []>} : vector<32x128xbf16>, vector<128x128xbf16>, vector<32x128xf32> -> vector<32x128xf32>
    %41 = arith.truncf %40 : vector<32x128xf32> to vector<32x128xbf16>
    %c0_27 = arith.constant 0 : index
    %c0_28 = arith.constant 0 : index
    %c0_29 = arith.constant 0 : index
    %42 = vector.load %arg10[%c0_27, %c0_28, %c0_29] : memref<1x32x128xbf16, #tpu.memory_space<vmem>>, vector<1x32x128xbf16>
    %43 = vector.shape_cast %42 : vector<1x32x128xbf16> to vector<32x128xbf16>
    %44 = vector.shape_cast %41 : vector<32x128xbf16> to vector<1x32x128xbf16>
    tpu.vector_store %arg10[%c0_27, %c0_28, %c0_29], %44 {strides = array<i32>} : memref<1x32x128xbf16, #tpu.memory_space<vmem>>, vector<1x32x128xbf16>,
    return
  }
  func.func @transform_0(%arg0: i32, %arg1: i32) -> (i32, i32) {
    %c0_i32 = arith.constant 0 : i32
    %c0_i32_0 = arith.constant 0 : i32
    return %arg1, %c0_i32 : i32, i32
  }
  func.func @transform_1(%arg0: i32, %arg1: i32) -> (i32, i32) {
    %c0_i32 = arith.constant 0 : i32
    %c0_i32_0 = arith.constant 0 : i32
    return %c0_i32, %arg0 : i32, i32
  }
  func.func @transform_2(%arg0: i32, %arg1: i32) -> (i32, i32) {
    %c0_i32 = arith.constant 0 : i32
    %c0_i32_0 = arith.constant 0 : i32
    return %c0_i32, %arg0 : i32, i32
  }
  func.func @transform_3(%arg0: i32, %arg1: i32) -> (i32, i32) {
    %c0_i32 = arith.constant 0 : i32
    %c0_i32_0 = arith.constant 0 : i32
    return %c0_i32, %arg0 : i32, i32
  }
  func.func @transform_4(%arg0: i32, %arg1: i32) -> (i32, i32) {
    %c0_i32 = arith.constant 0 : i32
    %c0_i32_0 = arith.constant 0 : i32
    return %arg1, %c0_i32 : i32, i32
  }
  func.func @transform_5(%arg0: i32, %arg1: i32) -> (i32, i32) {
    %c0_i32 = arith.constant 0 : i32
    %c0_i32_0 = arith.constant 0 : i32
    return %arg1, %c0_i32 : i32, i32
  }
  func.func @transform_6(%arg0: i32, %arg1: i32) -> (i32, i32, i32, i32) {
    %c0_i32 = arith.constant 0 : i32
    %c0_i32_0 = arith.constant 0 : i32
    %c0_i32_1 = arith.constant 0 : i32
    return %arg0, %c0_i32, %arg1, %c0_i32_0 : i32, i32, i32, i32
  }
  func.func @transform_7(%arg0: i32, %arg1: i32) -> (i32, i32, i32) {
    %c0_i32 = arith.constant 0 : i32
    %c0_i32_0 = arith.constant 0 : i32
    return %arg0, %arg1, %c0_i32 : i32, i32, i32
  }
  func.func @transform_8(%arg0: i32, %arg1: i32) -> (i32, i32, i32) {
    %c0_i32 = arith.constant 0 : i32
    %c0_i32_0 = arith.constant 0 : i32
    return %arg0, %arg1, %c0_i32 : i32, i32, i32
  }
}

</mosaic_0001>

<bundles_post_ra>
// kernel: tpu_custom_call.1
= control target key start
LH: loop header
LB: loop body
LE: loop exit
PB: predicated region body
PF: predicated region fallthrough
CT: control target
= control target key end

     0   :  { %s3059_s0 = inlined_call_operand.hbm [shape: bf16[128,128], index: 0, kind: input, shape index: {}]   ;;  %s3060_s1 = inlined_call_operand.hbm [shape: bf16[128,512], index: 1, kind: input, shape index: {}]   ;;  %s3061_s2 = inlined_call_operand.hbm [shape: bf16[128,256], index: 2, kind: input, shape index: {}]   ;;  %s3062_s3 = inlined_call_operand.hbm [shape: bf16[128,256], index: 3, kind: input, shape index: {}]   ;;  %s3063_s4 = inlined_call_operand.hbm [shape: f32[128,128], index: 4, kind: input, shape index: {}]   ;;  %s3064_s5 = inlined_call_operand.hbm [shape: f32[128,128], index: 5, kind: input, shape index: {}]   ;;  %s3065_s6 = inlined_call_operand.hbm [shape: bf16[2,2,128,128], index: 6, kind: output, shape index: {0}]   ;;  %s3066_s7 = inlined_call_operand.hbm [shape: bf16[2,128,128], index: 7, kind: output, shape index: {1}]   ;;  %s3067_s8 = inlined_call_operand.hbm [shape: bf16[2,128,128], index: 8, kind: output, shape index: {2}]  }
   0x1   :  { %3107 = sst [smem:[#allocation40_spill]] %s3059_s0 }
   0x2   :  { %3108 = sst [smem:[#allocation41_spill]] %s3060_s1 }
   0x3   :  { %3109 = sst [smem:[#allocation42_spill]] %s3062_s3 }
   0x4   :  { %3110 = sst [smem:[#allocation43_spill]] %s3063_s4 }
   0x5   :  { %3111 = sst [smem:[#allocation44_spill]] %s3064_s5 }
   0x6   :  { %3112 = sst [smem:[#allocation45_spill]] %s3065_s6 }
   0x7   :  { %3113 = sst [smem:[#allocation46_spill]] %s3066_s7 }
   0x8   :  { %3114 = sst [smem:[#allocation47_spill]] %s3067_s8 }
   0x9   :  { %14 = vsyncpa [#allocation3], 0 }
   0xa   :  { %16 = vsyncpa [#allocation3 + $0x1], 0 }
   0xb   :  { %17 = vsyncpa [#allocation6], 0 }
   0xc   :  { %19 = vsyncpa [#allocation6 + $0x1], 0 }
   0xd   :  { %20 = vsyncpa [#allocation9], 0 }
   0xe   :  { %22 = vsyncpa [#allocation9 + $0x1], 0 }
   0xf   :  { %23 = vsyncpa [#allocation12], 0 }
  0x10   :  { %25 = vsyncpa [#allocation12 + $0x1], 0 }
  0x11   :  { %26 = vsyncpa [#allocation4], 0 }
  0x12   :  { %28 = vsyncpa [#allocation4 + $0x1], 0 }
  0x13   :  { %29 = vsyncpa [#allocation15], 0 }
  0x14   :  { %31 = vsyncpa [#allocation15 + $0x1], 0  ;;  %s2354_s27 = smov 0   ;;  %s2356_s28 = smov 0  }
  0x15   :  { %s2358_s29 = smov 0   ;;  %s2360_s30 = smov 0  }
  0x16   :  { %s2362_s9 = smov 0   ;;  %s2364_s10 = smov 0  }
  0x17   :  { %s2366_s11 = smov 0   ;;  %s2368_s12 = smov 0  }
  0x18   :  { %s2370_s13 = smov 0   ;;  %s2372_s14 = smov 0  }
  0x19   :  { %s2374_s15 = smov 0   ;;  %s2376_s16 = smov 0  }
  0x1a   :  { %s2378_s17 = smov 0   ;;  %s2380_s18 = smov 0  }
  0x1b LB: > { %3115 = sst [smem:[#allocation26_spill]] %s2249_s9  ;;  %s2423_s19 = sadd.s32 4294967295, %s2285_s18   ;;  %s2285_s18 = sphi %s2380_s18, %s37_s18   ;;  %s2281_s17 = sphi %s2378_s17, %s3191_s17   ;;  %s2277_s16 = sphi %s2376_s16, %s3198_s16   ;;  %s2273_s15 = sphi %s2374_s15, %s3189_s15   ;;  %s2269_s14 = sphi %s2372_s14, %s3197_s14   ;;  %s2265_s13 = sphi %s2370_s13, %s3188_s13   ;;  %s2261_s12 = sphi %s2368_s12, %s3196_s12   ;;  %s2257_s11 = sphi %s2366_s11, %s3195_s11   ;;  %s2253_s10 = sphi %s2364_s10, %s3186_s10   ;;  %s2249_s9 = sphi %s2362_s9, %s3185_s9   ;;  %s2245_s30 = sphi %s2360_s30, %s3184_s30   ;;  %s2241_s29 = sphi %s2358_s29, %s3194_s29   ;;  %s2237_s28 = sphi %s2356_s28, %s3193_s28   ;;  %s2233_s27 = sphi %s2354_s27, %s3192_s27  }
  0x1c   : > { %3116 = sst [smem:[#allocation27_spill]] %s2253_s10  ;;  %p3075_p0 = scmp.eq.s32.totalorder %s2285_s18, 0 }
  0x1d   : > { %3117 = sst [smem:[#allocation28_spill]] %s2265_s13  ;;  %p3073_p1 = scmp.eq.s32.totalorder %s2423_s19, 0 }
  0x1e   : > { %3118 = sst [smem:[#allocation29_spill]] %s2269_s14  ;;  %p89_p2 = scmp.ne.s32.totalorder %s2253_s10, %s2249_s9 }
  0x1f   : > { %3119 = sst [smem:[#allocation30_spill]] %s2273_s15  ;;  %p95_p3 = scmp.ne.s32.totalorder %s2249_s9, %s2245_s30 }
  0x20   : > { %3120 = sst [smem:[#allocation31_spill]] %s2281_s17  ;;  %p91_p5 = por %p89_p2, %p3075_p0 }
  0x21   : > { %p2436_p6 = por %p95_p3, %p3073_p1  ;;  %p3072_p7 = scmp.lt.s32.totalorder %s2285_s18, 8 }
  0x22   : > { %s3074_s22 = sand.u32 1, %s2285_s18   ;;  %s3070_s23 = sand.u32 1, %s2253_s10  }
  0x23   : > { %s3121_s21 = scalar_select %p2436_p6, 1, 0 }
  0x24   : > { %s1472_s24 = sshll.u32 %s3070_s23, 7  ;;  %s1564_s25 = sshll.u32 %s2281_s17, 7 }
  0x25   : > { %3122 = sst [smem:[#allocation32_spill]] %s3121_s21  ;;  %s3123_s1 = sld [smem:[#allocation41_spill]] }
  0x26   : > { %s332_s30 = scalar_lea.vmem [#allocation5], %s1472_s24  ;;  %p2453_p8 = pnand %p3072_p7, %p91_p5 }
  0x27   : > { %s339_s7 = sshll.u32 %s332_s30, 4  ;;  %s2462_s23 = scalar_lea.sflag [#allocation6], %s3074_s22  ;;  %s2457_s7 = int_to_ptr.vmem [resolvable:$true] %s339_s7 }
  0x28   : > { %s3124_s6 = scalar_select %p2453_p8, 1, 0 }
  0x29   : > { %p2468_p11 = pneg %p2453_p8 }
  0x2b   : > { %s2449_s8 = scalar_lea.hbm %s3123_s1, %s1564_s25  ;;  %s1916_s30 = scalar_lea.hbm %s3123_s1, 4096 }
  0x2c   : > { %s1911_s20 = scalar_lea.hbm %s2449_s8, 2048  ;;  %p1917_p2 = scmp.lt.u32.totalorder %s2449_s8, %s3123_s1 }
  0x2d   : > { %p1912_p10 = scmp.ne.s32.totalorder %s2449_s8, %s1911_s20  ;;  %p1918_p3 = scmp.lt.u32.totalorder %s1916_s30, %s1911_s20 }
  0x2e   : > { %s3125_s25 = scalar_select %p2468_p11, 1, 0 }
  0x2f   : > { %p1914_p12 = pnand %p2468_p11, %p1912_p10  ;;  %p1919_p5 = por %p1918_p3, %p1917_p2 }
  0x30   : > { %p1920_p7 = scmp.lt.u32.totalorder %s1911_s20, %s2449_s8 }
  0x31   : > { %p1915_p13 = pneg %p1914_p12 }
  0x32   : > { %p1921_p4 = por %p1920_p7, %p1919_p5 }
  0x34   : > { %p1922_p1 = pnand %p1921_p4, %p1915_p13 }
  0x36   : > { %1925 = shalt.err (!%p1922_p1)
}
  0x37   : > { %s1926_s22 = scalar_lea.vmem %s2457_s7, 2048  ;;  %s2287_s24 = smov [#allocation5]  }
  0x38   : > { %p1927_p10 = scmp.ne.s32.totalorder %s2457_s7, %s1926_s22  ;;  %s1931_s26 = sshll.u32 %s2287_s24, 4  ;;  %s1932_s26 = int_to_ptr.vmem [resolvable:$false] %s1931_s26 }
  0x39   : > { %s1933_s14 = scalar_lea.vmem %s1932_s26, 4096  ;;  %p1934_p9 = scmp.lt.s32.totalorder %s2457_s7, %s1932_s26 }
  0x3a   : > { %p1929_p12 = pnand %p1927_p10, %p2468_p11  ;;  %p1935_p6 = scmp.lt.s32.totalorder %s1933_s14, %s1926_s22 }
  0x3c   : > { %p1930_p0 = pneg %p1929_p12  ;;  %p1936_p2 = por %p1935_p6, %p1934_p9 }
  0x3e   : > { %p1937_p3 = pnand %p1936_p2, %p1930_p0 }
  0x40   : > { %1940 = shalt.err (!%p1937_p3)
}
  0x41   : > { %s2288_s15 = smov 256   ;;  %s3084_s20 = smov 128  }
  0x42   : > { %s3082_s30 = smov 8   ;;  %p429_p1 = scmp.lt.s32.totalorder %s2285_s18, 9 }
  0x43   : > { %1718 = dma.hbm_to_vmem [thread:$0]  (!%p2453_p8), %s2449_s8, 2048, %s2457_s7, %s2462_s23, %s2288_s15, %s3084_s20, %s3082_s30  }
  0x44   : > { %s3126_s22 = sand.u32 1, %s2253_s10   ;;  %p3127_p0 = scmp.ge.s32.totalorder %s2285_s18, 1 }
  0x45   : > { %s1475_s24 = sshll.u32 %s3126_s22, 6  ;;  %s1476_s14 = sshll.u32 %s2281_s17, 6 }
  0x46   : > { %p2499_p4 = pnand %p3127_p0, %p429_p1  ;;  %s353_s1 = scalar_lea.vmem [#allocation7], %s1475_s24 }
  0x47   : > { %s359_s21 = sshll.u32 %s353_s1, 4  ;;  %s2507_s4 = scalar_lea.hbm %s3061_s2, %s1476_s14  ;;  %s2509_s21 = int_to_ptr.vmem [resolvable:$true] %s359_s21 }
  0x48   : > { %s3128_s26 = scalar_select %p2499_p4, 1, 0 }
  0x49   : > { %s3130_s3 = sld [smem:[#allocation42_spill]]  ;;  %s373_s22 = scalar_lea.vmem [#allocation8], %s1475_s24 }
  0x4a   : > { %3129 = sst [smem:[#allocation33_spill]] %s3128_s26  ;;  %s379_s30 = sshll.u32 %s373_s22, 4  ;;  %s2516_s30 = int_to_ptr.vmem [resolvable:$true] %s379_s30 }
  0x4b   : > { %s3131_s1 = sand.u32 1, %s2285_s18  }
  0x4c   : > { %s2520_s20 = scalar_lea.sflag [#allocation9], %s3131_s1 }
  0x4f   : > { %s2514_s15 = scalar_lea.hbm %s3130_s3, %s1476_s14  ;;  %s1946_s14 = scalar_lea.hbm %s3130_s3, 2048 }
  0x50   : > { %s1941_s5 = scalar_lea.hbm %s2514_s15, 1024  ;;  %p1947_p13 = scmp.lt.u32.totalorder %s2514_s15, %s3130_s3 }
  0x51   : > { %p1942_p6 = scmp.ne.s32.totalorder %s2514_s15, %s1941_s5  ;;  %p1948_p5 = scmp.lt.u32.totalorder %s1946_s14, %s1941_s5 }
  0x52   : > { %p1950_p12 = scmp.lt.u32.totalorder %s1941_s5, %s2514_s15 }
  0x53   : > { %p1944_p7 = pnand %p1942_p6, %p2468_p11  ;;  %p1949_p10 = por %p1948_p5, %p1947_p13 }
  0x55   : > { %p1945_p9 = pneg %p1944_p7  ;;  %p1951_p2 = por %p1950_p12, %p1949_p10 }
  0x57   : > { %p1952_p3 = pnand %p1951_p2, %p1945_p9 }
  0x59   : > { %1955 = shalt.err (!%p1952_p3)
}
  0x5a   : > { %s1956_s24 = scalar_lea.vmem %s2516_s30, 1024  ;;  %s2291_s22 = smov [#allocation8]  }
  0x5b   : > { %p1957_p1 = scmp.ne.s32.totalorder %s2516_s30, %s1956_s24  ;;  %s1961_s1 = sshll.u32 %s2291_s22, 4  ;;  %s1962_s1 = int_to_ptr.vmem [resolvable:$false] %s1961_s1 }
  0x5c   : > { %s1963_s26 = scalar_lea.vmem %s1962_s1, 2048  ;;  %p1964_p7 = scmp.lt.s32.totalorder %s2516_s30, %s1962_s1 }
  0x5d   : > { %p1959_p0 = pnand %p1957_p1, %p2468_p11  ;;  %p1965_p4 = scmp.lt.s32.totalorder %s1963_s26, %s1956_s24 }
  0x5f   : > { %p1960_p6 = pneg %p1959_p0  ;;  %p1966_p13 = por %p1965_p4, %p1964_p7 }
  0x61   : > { %p1967_p5 = pnand %p1966_p13, %p1960_p6 }
  0x63   : > { %1970 = shalt.err (!%p1967_p5)
}
  0x64   : > { %s3087_s5 = smov 64   ;;  %s3089_s9 = smov 4  }
  0x65   : > { %s3132_s7 = smov 128   ;;  %s46_s8 = sadd.s32 1, %s2277_s16 }
  0x66   : > { %1724 = dma.hbm_to_vmem [thread:$0]  (!%p2453_p8), %s2514_s15, 1024, %s2516_s30, %s2520_s20, %s3132_s7, %s3087_s5, %s3089_s9  }
  0x67   : > { %s49_s24 = sadd.s32 1, %s2281_s17  ;;  %p47_p4 = scmp.ge.s32.totalorder %s46_s8, 4 }
  0x68   : > { %s56_s22 = sadd.s32 1, %s2265_s13  ;;  %p63_p9 = scmp.ne.s32.totalorder %s2265_s13, %s2261_s12 }
  0x69   : > { %p69_p10 = scmp.ne.s32.totalorder %s2261_s12, %s2257_s11  ;;  %s3200_s8 = smov (%p47_p4, %s46_s8), 0 }
  0x6a   : > { %3133 = sst [smem:[#allocation34_spill]] %s3200_s8  ;;  %s3202_s24 = smov (!%p47_p4, %s49_s24), %s2281_s17 }
  0x6b   : > { %s53_s30 = ssub.s32 %s2277_s16, %s3200_s8  ;;  %p3134_p12 = scmp.eq.s32.totalorder %s2285_s18, 0 }
  0x6c   : > { %p51_p3 = scmp.ge.s32.totalorder %s3202_s24, 2  ;;  %p54_p1 = scmp.eq.s32.totalorder %s53_s30, 0 }
  0x6d   : > { %p2562_p2 = por %p3134_p12, %p63_p9  ;;  %p3136_p0 = scmp.eq.s32.totalorder %s2423_s19, 0 }
  0x6e   : > { %s214_s1 = sadd.s32 1, %s2241_s29  ;;  %s3204_s24 = smov (%p51_p3, %s3202_s24), 0 }
  0x6f   : > { %p2568_p6 = por %p3136_p0, %p69_p10  ;;  %3139 = sst [smem:[#allocation36_spill]] %s3204_s24 }
  0x70   : > { %s2576_s26 = scalar_select %p54_p1, %s2265_s13, %s56_s22  }
  0x71   : > { %s3137_s11 = scalar_select %p2568_p6, 1, 0 }
  0x72   : > { %3140 = sst [smem:[#allocation37_spill]] %s2576_s26  ;;  %s79_s5 = ssub.s32 %s2281_s17, %s3204_s24 }
  0x73   : > { %3138 = sst [smem:[#allocation35_spill]] %s3137_s11  ;;  %p224_p7 = scmp.ne.s32.totalorder %s2241_s29, %s2237_s28 }
  0x74   : > { %p80_p13 = scmp.eq.s32.totalorder %s79_s5, 0  ;;  %s211_s9 = sor.u32 %s79_s5, %s53_s30 }
  0x75   : > { %p212_p5 = scmp.eq.s32.totalorder %s211_s9, 0  ;;  %p3141_p4 = scmp.eq.s32.totalorder %s2423_s19, 7 }
  0x76   : > { %s3143_s3 = sadd.s32 1, %s2253_s10  ;;  %p230_p10 = scmp.ne.s32.totalorder %s2237_s28, %s2233_s27 }
  0x77   : > { %p2584_p9 = por %p3141_p4, %p224_p7  ;;  %s3146_s22 = sadd.s32 4294967294, %s2285_s18  }
  0x78   : > { %s2591_s8 = scalar_select %p80_p13, %s2253_s10, %s3143_s3  }
  0x79   : > { %s3142_s14 = scalar_select %p2584_p9, 1, 0 }
  0x7a   : > { %3144 = sst [smem:[#allocation38_spill]] %s2591_s8  ;;  %p231_p12 = scmp.eq.s32.totalorder %s3146_s22, 7 }
  0x7b   : > { %s2594_s11 = scalar_select %p212_p5, %s2241_s29, %s214_s1  }
  0x7c   : > { %s2601_s26 = sand.u32 1, %s2265_s13   ;;  %s1563_s5 = sshll.u32 %s2277_s16, 8 }
  0x7d   : > { %3145 = sst [smem:[#allocation39_spill]] %s2594_s11  ;;  %p2604_p3 = por %p231_p12, %p230_p10 }
  0x7e   : > { %s1469_s30 = sshll.u32 %s2601_s26, 4  ;;  %s3148_s0 = sld [smem:[#allocation40_spill]] }
  0x7f   : > { %s3147_s9 = scalar_select %p2604_p3, 1, 0 }
  0x80   : > { %p3149_p1 = scmp.lt.s32.totalorder %s2285_s18, 8  ;;  %s311_s22 = scalar_lea.vmem [#allocation2], %s1469_s30 }
  0x81   : > { %s318_s13 = sshll.u32 %s311_s22, 4  ;;  %s2623_s13 = int_to_ptr.vmem [resolvable:$true] %s318_s13 }
  0x82   : > { %p2618_p0 = pnand %p3149_p1, %p2562_p2 }
  0x84   : > { %s2612_s3 = scalar_lea.hbm %s3148_s0, %s1563_s5  ;;  %p2630_p13 = pneg %p2618_p0 }
  0x85   : > { %s3150_s1 = scalar_select %p2618_p0, 1, 0 }
  0x86   : > { %s1971_s17 = scalar_lea.hbm %s2612_s3, 256  ;;  %s1976_s30 = scalar_lea.hbm %s3148_s0, 1024 }
  0x87   : > { %p1972_p7 = scmp.ne.s32.totalorder %s2612_s3, %s1971_s17  ;;  %p1977_p4 = scmp.lt.u32.totalorder %s2612_s3, %s3148_s0 }
  0x88   : > { %p1978_p10 = scmp.lt.u32.totalorder %s1976_s30, %s1971_s17  ;;  %p1980_p1 = scmp.lt.u32.totalorder %s1971_s17, %s2612_s3 }
  0x89   : > { %p1974_p2 = pnand %p2630_p13, %p1972_p7 }
  0x8a   : > { %p1979_p12 = por %p1978_p10, %p1977_p4 }
  0x8b   : > { %p1975_p5 = pneg %p1974_p2 }
  0x8c   : > { %p1981_p3 = por %p1980_p1, %p1979_p12 }
  0x8e   : > { %p1982_p9 = pnand %p1981_p3, %p1975_p5 }
  0x90   : > { %1985 = shalt.err (!%p1982_p9)
}
  0x91   : > { %s1986_s10 = scalar_lea.vmem %s2623_s13, 256  ;;  %s2294_s15 = smov [#allocation2]  }
  0x92   : > { %p1987_p7 = scmp.ne.s32.totalorder %s2623_s13, %s1986_s10  ;;  %s1991_s5 = sshll.u32 %s2294_s15, 4  ;;  %s1992_s5 = int_to_ptr.vmem [resolvable:$false] %s1991_s5 }
  0x93   : > { %s1993_s8 = scalar_lea.vmem %s1992_s5, 512  ;;  %p1994_p8 = scmp.lt.s32.totalorder %s2623_s13, %s1992_s5 }
  0x94   : > { %p1989_p2 = pnand %p1987_p7, %p2630_p13  ;;  %p1995_p11 = scmp.lt.s32.totalorder %s1993_s8, %s1986_s10 }
  0x96   : > { %p1990_p6 = pneg %p1989_p2  ;;  %p1996_p4 = por %p1995_p11, %p1994_p8 }
  0x98   : > { %p1997_p10 = pnand %p1996_p4, %p1990_p6 }
  0x9a   : > { %2000 = shalt.err (!%p1997_p10)
}
  0x9b   : > { %s3152_s17 = smov 4   ;;  %s3153_s30 = smov 64  }
  0x9c   : > { %s3154_s22 = scalar_lea.sflag [#allocation3], %s2601_s26  ;;  %s2001_s15 = scalar_lea.hbm %s2507_s4, 1024 }
  0x9d   : > { %1715 = dma.hbm_to_vmem [thread:$0]  (!%p2618_p0), %s2612_s3, 256, %s2623_s13, %s3154_s22, %s3153_s30, %s3153_s30, %s3152_s17  }
  0x9e   : > { %p2002_p9 = scmp.ne.s32.totalorder %s2507_s4, %s2001_s15  ;;  %p3155_p8 = scmp.ne.s32.totalorder %s3125_s25, 0 }
  0x9f   : > { %s2006_s8 = scalar_lea.hbm %s3061_s2, 2048  ;;  %p2007_p3 = scmp.lt.u32.totalorder %s2507_s4, %s3061_s2 }
  0xa0   : > { %p2004_p11 = pnand %p2002_p9, %p3155_p8  ;;  %p2008_p5 = scmp.lt.u32.totalorder %s2006_s8, %s2001_s15 }
  0xa1   : > { %p2010_p1 = scmp.lt.u32.totalorder %s2001_s15, %s2507_s4 }
  0xa2   : > { %p2005_p6 = pneg %p2004_p11  ;;  %p2009_p12 = por %p2008_p5, %p2007_p3 }
  0xa4   : > { %p2011_p7 = por %p2010_p1, %p2009_p12 }
  0xa6   : > { %p2012_p2 = pnand %p2011_p7, %p2005_p6 }
  0xa8   : > { %2015 = shalt.err (!%p2012_p2)
}
  0xa9   : > { %s2016_s13 = scalar_lea.vmem %s2509_s21, 1024  ;;  %s2295_s3 = smov [#allocation7]  }
  0xaa   : > { %p2017_p4 = scmp.ne.s32.totalorder %s2509_s21, %s2016_s13  ;;  %s2021_s22 = sshll.u32 %s2295_s3, 4  ;;  %s2022_s22 = int_to_ptr.vmem [resolvable:$false] %s2021_s22 }
  0xab   : > { %s2023_s0 = scalar_lea.vmem %s2022_s22, 2048  ;;  %p2024_p11 = scmp.lt.s32.totalorder %s2509_s21, %s2022_s22 }
  0xac   : > { %p2019_p10 = pnand %p2017_p4, %p3155_p8  ;;  %p2025_p0 = scmp.lt.s32.totalorder %s2023_s0, %s2016_s13 }
  0xae   : > { %p2020_p9 = pneg %p2019_p10  ;;  %p2026_p3 = por %p2025_p0, %p2024_p11 }
  0xb0   : > { %p2027_p5 = pnand %p2026_p3, %p2020_p9 }
  0xb2   : > { %2030 = shalt.err (!%p2027_p5)
}
  0xb3   : > { %p3156_p6 = scmp.ne.s32.totalorder %s3124_s6, 0  ;;  %s1565_s25 = sshll.u32 %s2277_s16, 9 }
  0xb4   : > { %s3157_s10 = sld [smem:[#allocation43_spill]]  ;;  %s3159_s13 = sshll.u32 %s2601_s26, 5 }
  0xb5   : > { %1721 = dma.hbm_to_vmem [thread:$0]  (!%p3156_p6), %s2507_s4, 1024, %s2509_s21, %s2462_s23, %s3132_s7, %s3153_s30, %s3152_s17  }
  0xb6   : > { %s393_s6 = scalar_lea.vmem [#allocation10], %s3159_s13 }
  0xb7   : > { %s400_s3 = sshll.u32 %s393_s6, 4  ;;  %s2693_s3 = int_to_ptr.vmem [resolvable:$true] %s400_s3 }
  0xba   : > { %s3158_s5 = smov %s3157_s10  ;;  %s2689_s8 = scalar_lea.hbm %s3157_s10, %s1565_s25 }
  0xbb   : > { %s2031_s22 = scalar_lea.hbm %s2689_s8, 512  ;;  %s2036_s23 = scalar_lea.hbm %s3158_s5, 2048 }
  0xbc   : > { %p2032_p0 = scmp.ne.s32.totalorder %s2689_s8, %s2031_s22  ;;  %p2037_p1 = scmp.lt.u32.totalorder %s2689_s8, %s3158_s5 }
  0xbd   : > { %p2038_p7 = scmp.lt.u32.totalorder %s2036_s23, %s2031_s22  ;;  %p2040_p4 = scmp.lt.u32.totalorder %s2031_s22, %s2689_s8 }
  0xbe   : > { %p2034_p8 = pnand %p2032_p0, %p2630_p13 }
  0xbf   : > { %p2039_p2 = por %p2038_p7, %p2037_p1 }
  0xc0   : > { %p2035_p12 = pneg %p2034_p8 }
  0xc1   : > { %p2041_p10 = por %p2040_p4, %p2039_p2 }
  0xc3   : > { %p2042_p9 = pnand %p2041_p10, %p2035_p12 }
  0xc5   : > { %2045 = shalt.err (!%p2042_p9)
}
  0xc6   : > { %s2046_s0 = scalar_lea.vmem %s2693_s3, 512  ;;  %s2296_s11 = smov [#allocation10]  }
  0xc7   : > { %p2047_p11 = scmp.ne.s32.totalorder %s2693_s3, %s2046_s0  ;;  %s2051_s15 = sshll.u32 %s2296_s11, 4  ;;  %s2052_s15 = int_to_ptr.vmem [resolvable:$false] %s2051_s15 }
  0xc8   : > { %s2053_s10 = scalar_lea.vmem %s2052_s15, 1024  ;;  %p2054_p6 = scmp.lt.s32.totalorder %s2693_s3, %s2052_s15 }
  0xc9   : > { %p2049_p3 = pnand %p2047_p11, %p2630_p13  ;;  %p2055_p0 = scmp.lt.s32.totalorder %s2053_s10, %s2046_s0 }
  0xcb   : > { %p2050_p5 = pneg %p2049_p3  ;;  %p2056_p8 = por %p2055_p0, %p2054_p6 }
  0xcd   : > { %p2057_p1 = pnand %p2056_p8, %p2050_p5 }
  0xcf   : > { %2060 = shalt.err (!%p2057_p1)
}
  0xd0   : > { %p3160_p12 = scmp.ne.s32.totalorder %s3150_s1, 0  ;;  %s3161_s13 = smov 8  }
  0xd1   : > { %s3162_s4 = sld [smem:[#allocation44_spill]]  ;;  %s3163_s23 = sshll.u32 %s2601_s26, 5 }
  0xd2   : > { %1727 = dma.hbm_to_vmem [thread:$0]  (!%p3160_p12), %s2689_s8, 512, %s2693_s3, %s2520_s20, %s3132_s7, %s3132_s7, %s3161_s13  }
  0xd3   : > { %s414_s17 = scalar_lea.vmem [#allocation11], %s3163_s23  ;;  %s411_s0 = scalar_lea.sflag [#allocation12], %s2601_s26 }
  0xd4   : > { %s421_s30 = sshll.u32 %s414_s17, 4  ;;  %s2729_s30 = int_to_ptr.vmem [resolvable:$true] %s421_s30 }
  0xd7   : > { %s2725_s21 = scalar_lea.hbm %s3162_s4, %s1565_s25  ;;  %s2066_s25 = scalar_lea.hbm %s3162_s4, 2048 }
  0xd8   : > { %s2061_s11 = scalar_lea.hbm %s2725_s21, 512  ;;  %p2067_p10 = scmp.lt.u32.totalorder %s2725_s21, %s3162_s4 }
  0xd9   : > { %p2062_p7 = scmp.ne.s32.totalorder %s2725_s21, %s2061_s11  ;;  %p2068_p9 = scmp.lt.u32.totalorder %s2066_s25, %s2061_s11 }
  0xda   : > { %p2070_p3 = scmp.lt.u32.totalorder %s2061_s11, %s2725_s21 }
  0xdb   : > { %p2064_p2 = pnand %p2062_p7, %p2630_p13  ;;  %p2069_p11 = por %p2068_p9, %p2067_p10 }
  0xdd   : > { %p2065_p4 = pneg %p2064_p2  ;;  %p2071_p5 = por %p2070_p3, %p2069_p11 }
  0xdf   : > { %p2072_p6 = pnand %p2071_p5, %p2065_p4 }
  0xe1   : > { %2075 = shalt.err (!%p2072_p6)
}
  0xe2   : > { %s2076_s10 = scalar_lea.vmem %s2729_s30, 512  ;;  %s2297_s6 = smov [#allocation11]  }
  0xe3   : > { %p2077_p0 = scmp.ne.s32.totalorder %s2729_s30, %s2076_s10  ;;  %s2081_s22 = sshll.u32 %s2297_s6, 4  ;;  %s2082_s22 = int_to_ptr.vmem [resolvable:$false] %s2081_s22 }
  0xe4   : > { %s2083_s23 = scalar_lea.vmem %s2082_s22, 1024  ;;  %p2084_p7 = scmp.lt.s32.totalorder %s2729_s30, %s2082_s22 }
  0xe5   : > { %p2079_p8 = pnand %p2077_p0, %p2630_p13  ;;  %p2085_p2 = scmp.lt.s32.totalorder %s2083_s23, %s2076_s10 }
  0xe7   : > { %p2080_p1 = pneg %p2079_p8  ;;  %p2086_p10 = por %p2085_p2, %p2084_p7 }
  0xe9   : > { %p2087_p9 = pnand %p2086_p10, %p2080_p1 }
  0xeb   : > { %2090 = shalt.err (!%p2087_p9)
}
  0xec   : > { %1730 = dma.hbm_to_vmem [thread:$0]  (!%p3160_p12), %s2725_s21, 512, %s2729_s30, %s411_s0, %s3132_s7, %s3132_s7, %s3161_s13  }
  0xed   : > { %s3164_s24 = sld [smem:[#allocation33_spill]] }
  0xf3   : > { %p3165_p13 = scmp.ne.s32.totalorder %s3164_s24, 0 }
  0xf4   : > { %s3166_s17 = sld [smem:[#allocation35_spill]] (!%p3165_p13)  ;;  %s435_s11 = sand.u32 (!%p3165_p13), 1, %s2261_s12  }
  0xf5   : > { %433 = sbr.rel (%p3165_p13) target bundleno = 724 (0x2d4), region = 44  ;;  %s1486_s20 = sshll.u32 (!%p3165_p13), %s435_s11, 4 }
  0xf6   : > { %s436_s8 = scalar_lea.sflag (!%p3165_p13), [#allocation3], %s435_s11  ;;  %s2761_s25 = scalar_lea.vmem (!%p3165_p13), [#allocation2], %s1486_s20 }
  0xfa   : > { %p3167_p4 = scmp.ne.s32.totalorder (!%p3165_p13), %s3166_s17, 0 }
  0xfc   : > { %2204 = dma.done.wait (%p3167_p4), %s436_s8, 256  }
  0xfd   : > { %2206 = vsyncadd (%p3167_p4), %s436_s8, 4294967040  ;;  %s3168_s26 = sld [smem:[#allocation26_spill]]  ;;  %s3169_s1 = sld [smem:[#allocation32_spill]] }
  0xfe   : > { %s2768_s3 = sand.u32 1, %s2423_s19  }
  0xff   : > { %s445_s21 = scalar_lea.sflag [#allocation6], %s2768_s3 }
 0x103   : > { %s446_s7 = sand.u32 1, %s3168_s26   ;;  %p3170_p12 = scmp.ne.s32.totalorder %s3169_s1, 0 }
 0x104   : > { %s1487_s13 = sshll.u32 %s446_s7, 7 }
 0x105   : > { %s2772_s30 = scalar_lea.vmem [#allocation5], %s1487_s13 }
 0x106   : > { %2208 = dma.done.wait (%p3170_p12), %s445_s21, 3072  }
 0x107   : > { %2210 = vsyncadd (%p3170_p12), %s445_s21, 4294964224  ;;  %s1488_s0 = sshll.u32 %s446_s7, 6  ;;  %s463_s10 = scalar_lea.sflag [#allocation9], %s2768_s3 }
 0x108   : > { %s2778_s15 = scalar_lea.vmem [#allocation7], %s1488_s0  ;;  %s2781_s6 = scalar_lea.vmem [#allocation8], %s1488_s0 }
 0x109   : > { %2212 = dma.done.wait (%p3170_p12), %s463_s10, 1024  }
 0x10a   : > { %2214 = vsyncadd (%p3170_p12), %s463_s10, 4294966272  ;;  %s1490_s19 = sshll.u32 %s435_s11, 5 }
 0x10b   : > { %s2787_s22 = scalar_lea.vmem [#allocation10], %s1490_s19 }
 0x10c   : > { %2216 = dma.done.wait (%p3167_p4), %s463_s10, 512  }
 0x10d   : > { %2218 = vsyncadd (%p3167_p4), %s463_s10, 4294966784  ;;  %s481_s23 = scalar_lea.sflag [#allocation12], %s435_s11  ;;  %s2793_s24 = scalar_lea.vmem [#allocation11], %s1490_s19 }
 0x10e   : > { %2220 = dma.done.wait (%p3167_p4), %s481_s23, 512  }
 0x10f   : > { %2222 = vsyncadd (%p3167_p4), %s481_s23, 4294966784  ;;  %v2298_v0 = vmov 0   ;;  %v1869_v1 = vld [vmem:[%s2772_s30 + $0x4] ss:$8 sps:$4 sm:$0xff]   ;;  %v1871_v2 = vld [vmem:[%s2772_s30] ss:$8 sps:$4 sm:$0xff]   ;;  %v572_v53 = vlaneseq }
 0x110   : > { %723 = vmatprep.mubr.bf16.mxu0 %v2298_v0  ;;  %691 = vmatprep.subr.bf16.mxu0 %v1869_v1  ;;  %v1872_v3 = vld [vmem:[%s2778_s15] sm:$0xff]   ;;  %v1873_v4 = vld [vmem:[%s2772_s30 + $0x14] ss:$8 sps:$4 sm:$0xff]   ;;  %v1875_v5 = vld [vmem:[%s2772_s30 + $0x10] ss:$8 sps:$4 sm:$0xff]   ;;  %s2836_s17 = sand.u32 1, %s2237_s28  }
 0x111   : > { %692 = vmatpush1.bf16.msra.mxu0 %v1871_v2  ;;  %1648 = vmatprep.subr.bf16.mxu1 %v1872_v3  ;;  %v1876_v6 = vld [vmem:[%s2778_s15 + $0x8] sm:$0xff]   ;;  %v1880_v8 = vld [vmem:[%s2778_s15 + $0x10] sm:$0xff]   ;;  %v1884_v11 = vld [vmem:[%s2778_s15 + $0x18] sm:$0xff]   ;;  %s3105_s11 = smov 64   ;;  %s1493_s20 = sshll.u32 %s2836_s17, 4  ;;  %v573_v55 = vand.u32 127, %v572_v53 }
 0x112   : > { %1649 = vmatpush3.bf16.msra.mxu1 %v1872_v3  ;;  %693 = vmatprep.subr.bf16.mxu0 %v1873_v4  ;;  %v1877_v7 = vld [vmem:[%s2772_s30 + $0x24] ss:$8 sps:$4 sm:$0xff]   ;;  %v1879_v9 = vld [vmem:[%s2772_s30 + $0x20] ss:$8 sps:$4 sm:$0xff]   ;;  %v1881_v10 = vld [vmem:[%s2772_s30 + $0x34] ss:$8 sps:$4 sm:$0xff]  }
 0x113   : > { %1650 = vmatprep.subr.bf16.mxu1 %v1876_v6  ;;  %v1883_v12 = vld [vmem:[%s2772_s30 + $0x30] ss:$8 sps:$4 sm:$0xff]   ;;  %v1885_v13 = vld [vmem:[%s2772_s30 + $0x44] ss:$8 sps:$4 sm:$0xff]   ;;  %v1887_v15 = vld [vmem:[%s2772_s30 + $0x40] ss:$8 sps:$4 sm:$0xff]  }
 0x114   : > { %v1888_v14 = vld [vmem:[%s2778_s15 + $0x20] sm:$0xff]   ;;  %v1889_v16 = vld [vmem:[%s2772_s30 + $0x54] ss:$8 sps:$4 sm:$0xff]   ;;  %v1891_v17 = vld [vmem:[%s2772_s30 + $0x50] ss:$8 sps:$4 sm:$0xff]   ;;  %s2877_s8 = scalar_lea.vmem [#allocation16], %s1493_s20 }
 0x115   : > { %694 = vmatpush1.bf16.msra.mxu0 %v1875_v5  ;;  %v1892_v18 = vld [vmem:[%s2778_s15 + $0x28] sm:$0xff]   ;;  %v1901_v19 = vld [vmem:[%s2761_s25] sm:$0xff]   ;;  %v1900_v24 = vld [vmem:[%s2778_s15 + $0x38] sm:$0xff]   ;;  %vm574_vm0 = vcmp.lt.s32.totalorder %v573_v55, 64  ;;  %s2901_s1 = scalar_lea.vmem [#allocation14], %s1493_s20  ;;  %s1112_s7 = scalar_lea.sflag [#allocation4], %s2836_s17 }
 0x116   : > { %695 = vmatprep.subr.bf16.mxu0 %v1877_v7  ;;  %1651 = vmatpush3.bf16.msra.mxu1 %v1876_v6  ;;  %v1893_v20 = vld [vmem:[%s2772_s30 + $0x64] ss:$8 sps:$4 sm:$0xff]   ;;  %v1896_v21 = vld [vmem:[%s2778_s15 + $0x30] sm:$0xff]   ;;  %v1895_v22 = vld [vmem:[%s2772_s30 + $0x60] ss:$8 sps:$4 sm:$0xff]  }
 0x117   : > { %1652 = vmatprep.subr.bf16.mxu1 %v1880_v8  ;;  %1664 = vmatprep.mubr.bf16.mxu1 %v1901_v19  ;;  %v1897_v23 = vld [vmem:[%s2772_s30 + $0x74] ss:$8 sps:$4 sm:$0xff]   ;;  %v1899_v25 = vld [vmem:[%s2772_s30 + $0x70] ss:$8 sps:$4 sm:$0xff]   ;;  %v1903_v26 = vld [vmem:[%s2781_s6] sm:$0xff]  }
 0x118   : > { %v1902_v27 = vld [vmem:[%s2761_s25 + $0x8] sm:$0xff]   ;;  %v1905_v29 = vld [vmem:[%s2781_s6 + $0x10] sm:$0xff]   ;;  %v1907_v31 = vld [vmem:[%s2781_s6 + $0x20] sm:$0xff]   ;;  %s1492_s25 = sshll.u32 %s2836_s17, 5 }
 0x119   : > { %696 = vmatpush1.bf16.msra.mxu0 %v1879_v9  ;;  %v1904_v28 = vld [vmem:[%s2781_s6 + $0x8] sm:$0xff]   ;;  %v1906_v30 = vld [vmem:[%s2781_s6 + $0x18] sm:$0xff]   ;;  %v1909_v33 = vld [vmem:[%s2781_s6 + $0x30] sm:$0xff]   ;;  %s2890_s26 = scalar_lea.vmem [#allocation13], %s1492_s25 }
 0x11a   : > { %697 = vmatprep.subr.bf16.mxu0 %v1881_v10  ;;  %1653 = vmatpush3.bf16.msra.mxu1 %v1880_v8  ;;  %v1908_v32 = vld [vmem:[%s2781_s6 + $0x28] sm:$0xff]   ;;  %v1910_v34 = vld [vmem:[%s2781_s6 + $0x38] sm:$0xff]   ;;  %v568_v56 = vld [vmem:[%s2793_s24] sm:$0xff] }
 0x11b   : > { %1654 = vmatprep.subr.bf16.mxu1 %v1884_v11  ;;  %v569_v54 = vld [vmem:[%s2793_s24 + $0x8] sm:$0xff]  ;;  %v575_v58 = vsub.f32 0.0, %v568_v56  ;;  %v564_v62 = vld [vmem:[%s2787_s22] sm:$0xff]  ;;  %v570_v4 = vld [vmem:[%s2793_s24 + $0x10] sm:$0xff] }
 0x11c   : > { %v576_v57 = vsub.f32 0.0, %v569_v54  ;;  %v565_v60 = vld [vmem:[%s2787_s22 + $0x8] sm:$0xff]  ;;  %v571_v8 = vld [vmem:[%s2793_s24 + $0x18] sm:$0xff] }
 0x11d   : > { %698 = vmatpush1.bf16.msra.mxu0 %v1883_v12  ;;  %v579_v1 = vsel %vm574_vm0, %v575_v58, %v568_v56 }
 0x11e   : > { %699 = vmatprep.subr.bf16.mxu0 %v1885_v13  ;;  %1655 = vmatpush3.bf16.msra.mxu1 %v1884_v11  ;;  %v580_v61 = vsel %vm574_vm0, %v576_v57, %v569_v54  ;;  %v577_v11 = vsub.f32 0.0, %v570_v4 }
 0x11f   : > { %1656 = vmatprep.subr.bf16.mxu1 %v1888_v14 }
 0x121   : > { %700 = vmatpush1.bf16.msra.mxu0 %v1887_v15 }
 0x122   : > { %701 = vmatprep.subr.bf16.mxu0 %v1889_v16  ;;  %1657 = vmatpush3.bf16.msra.mxu1 %v1888_v14 }
 0x123   : > { %1658 = vmatprep.subr.bf16.mxu1 %v1892_v18 }
 0x125   : > { %702 = vmatpush1.bf16.msra.mxu0 %v1891_v17 }
 0x126   : > { %703 = vmatprep.subr.bf16.mxu0 %v1893_v20  ;;  %1659 = vmatpush3.bf16.msra.mxu1 %v1892_v18  ;;  %v578_v18 = vsub.f32 0.0, %v571_v8 }
 0x127   : > { %1660 = vmatprep.subr.bf16.mxu1 %v1896_v21 }
 0x129   : > { %704 = vmatpush1.bf16.msra.mxu0 %v1895_v22  ;;  %v581_v22 = vsel %vm574_vm0, %v577_v11, %v570_v4 }
 0x12a   : > { %705 = vmatprep.subr.bf16.mxu0 %v1897_v23  ;;  %1661 = vmatpush3.bf16.msra.mxu1 %v1896_v21 }
 0x12b   : > { %1662 = vmatprep.subr.bf16.mxu1 %v1900_v24 }
 0x12d   : > { %706 = vmatpush1.bf16.msra.mxu0 %v1899_v25 }
 0x12e   : > { %1668 = vmatprep.subr.bf16.mxu0 %v1903_v26  ;;  %1663 = vmatpush3.bf16.msra.mxu1 %v1900_v24 }
 0x130   : > { %724 = vmatmul.mubr.bf16.vlgmr.msra.gmra.mrb[0].mxu0 %v1901_v19 }
 0x131   : > { %733 = vmatprep.mubr.bf16.mxu0 %v2298_v0  ;;  %1669 = vmatpush3.bf16.msra.mxu0 %v1903_v26 }
 0x132   : > { %1665 = vmatmul.mubr.bf16.vlgmr.msra.gmra.mrb[0].mxu1 %v1902_v27  ;;  %1670 = vmatprep.subr.bf16.mxu0 %v1904_v28 }
 0x135   : > { %1671 = vmatpush3.bf16.msra.mxu0 %v1904_v28 }
 0x136   : > { %1672 = vmatprep.subr.bf16.mxu0 %v1905_v29 }
 0x138   : > { %734 = vmatmul.mubr.bf16.gmra.mrb[4].mxu0 %v1902_v27 }
 0x139   : > { %1673 = vmatpush3.bf16.msra.mxu0 %v1905_v29  ;;  %1684 = vmatprep.mubr.bf16.mxu0 %v1901_v19  ;;  %v582_v29 = vsel %vm574_vm0, %v578_v18, %v571_v8 }
 0x13a   : > { %1674 = vmatprep.subr.bf16.mxu0 %v1906_v30 }
 0x13d   : > { %1675 = vmatpush3.bf16.msra.mxu0 %v1906_v30 }
 0x13e   : > { %1676 = vmatprep.subr.bf16.mxu0 %v1907_v31 }
 0x141   : > { %1677 = vmatpush3.bf16.msra.mxu0 %v1907_v31  ;;  %v566_v31 = vld [vmem:[%s2787_s22 + $0x10] sm:$0xff] }
 0x142   : > { %1678 = vmatprep.subr.bf16.mxu0 %v1908_v32 }
 0x145   : > { %1679 = vmatpush3.bf16.msra.mxu0 %v1908_v32  ;;  %v567_v32 = vld [vmem:[%s2787_s22 + $0x18] sm:$0xff] }
 0x146   : > { %1680 = vmatprep.subr.bf16.mxu0 %v1909_v33 }
 0x149   : > { %1681 = vmatpush3.bf16.msra.mxu0 %v1909_v33 }
 0x14a   : > { %1682 = vmatprep.subr.bf16.mxu0 %v1910_v34 }
 0x14d   : > { %1683 = vmatpush3.bf16.msra.mxu0 %v1910_v34 }
 0x150   : > { %1685 = vmatmul.mubr.bf16.vlgmr.msra.gmra.mrb[8].mxu0 %v1902_v27 }
 0x203   : > { %v2838_v35 = vpop.f32.mrb[0].mxu0 }
 0x204   : > { %748 = vrot.lane.b32.xlu0 %v2838_v35, %s3105_s11  ;;  %v727_v36 = vpop.f32.mrb[1].mxu0  ;;  %v744_v24 = vmul.f32 %v2838_v35, %v564_v62 }
 0x205   : > { %v2842_v37 = vpop.f32.mrb[0].mxu1  ;;  %v2844_v38 = vpop.f32.mrb[2].mxu0  ;;  %v784_v5 = vmul.f32 %v727_v36, %v564_v62 }
 0x206   : > { %v923_v39 = vpop.f32.mrb[1].mxu1  ;;  %v731_v40 = vpop.f32.mrb[3].mxu0  ;;  %v745_v26 = vmul.f32 %v2844_v38, %v565_v60  ;;  %v940_v58 = vmul.f32 %v2842_v37, %v566_v31 }
 0x207   : > { %v2846_v41 = vpop.f32.mrb[2].mxu1  ;;  %790 = vrot.lane.b32.xlu1 %v731_v40, %s3105_s11  ;;  %v785_v0 = vmul.f32 %v731_v40, %v565_v60  ;;  %v938_v15 = vmul.f32 %v923_v39, %v564_v62 }
 0x208   : > { %v926_v42 = vpop.f32.mrb[3].mxu1  ;;  %788 = vrot.lane.b32.xlu0 %v727_v36, %s3105_s11 }
 0x209   : > { %v939_v12 = vmul.f32 %v926_v42, %v565_v60 }
 0x20b   : > { %944 = vrot.lane.b32.xlu1 %v926_v42, %s3105_s11  ;;  %v2851_v43 = vpop.f32.mrb[4].mxu0 }
 0x20c   : > { %942 = vrot.lane.b32.xlu0 %v923_v39, %s3105_s11  ;;  %v2854_v44 = vpop.f32.mrb[5].mxu0  ;;  %v746_v35 = vmul.f32 %v2851_v43, %v566_v31 }
 0x20d   : > { %v2856_v45 = vpop.f32.mrb[6].mxu0 }
 0x20e   : > { %v2858_v46 = vpop.f32.mrb[7].mxu0 }
 0x20f   : > { %752 = vrot.lane.b32.xlu1 %v2851_v43, %s3105_s11 }
 0x210   : > { %750 = vrot.lane.b32.xlu0 %v2844_v38, %s3105_s11  ;;  %v747_v38 = vmul.f32 %v2856_v45, %v567_v32 }
 0x213   : > { %754 = vrot.lane.b32.xlu1 %v2856_v45, %s3105_s11 }
 0x214   : > { %792 = vrot.lane.b32.xlu0 %v2854_v44, %s3105_s11 }
 0x217   : > { %794 = vrot.lane.b32.xlu1 %v2858_v46, %s3105_s11 }
 0x218   : > { %946 = vrot.lane.b32.xlu0 %v2842_v37, %s3105_s11 }
 0x21b   : > { %948 = vrot.lane.b32.xlu1 %v2846_v41, %s3105_s11 }
 0x223   : > { %v1686_v47 = vpop.f32.mrb[8].mxu0 }
 0x224   : > { %v1076_v48 = vpop.f32.mrb[9].mxu0 }
 0x225   : > { %v1687_v49 = vpop.f32.mrb[10].mxu0 }
 0x226   : > { %v1621_v50 = vpack.c.bf16 %v1687_v49, %v1686_v47  ;;  %v1079_v51 = vpop.f32.mrb[11].mxu0 }
 0x227   : > { %v1616_v52 = vpack.c.bf16 %v1079_v51, %v1076_v48  ;;  %v786_v51 = vmul.f32 %v2854_v44, %v566_v31 }
 0x228   : > { %1627 = vst [vmem:[%s2877_s8 + $0x8] sm:$0xff] %v1621_v50  }
 0x229   : > { %1617 = vst [vmem:[%s2877_s8] sm:$0xff] %v1616_v52   ;;  %v787_v52 = vmul.f32 %v2858_v46, %v567_v32 }
 0x276   : > { %v749_v59 = vpop.permute.xlu0 %748 }
 0x277   : > { %v756_v20 = vmul.f32 %v749_v59, %v579_v1  ;;  %v941_v59 = vmul.f32 %v2846_v41, %v567_v32 }
 0x279   : > { %v791_v63 = vpop.permute.xlu1 %790  ;;  %v760_v33 = vadd.f32 %v756_v20, %v744_v24 }
 0x27a   : > { %v797_v2 = vmul.f32 %v791_v63, %v580_v61  ;;  %v789_v3 = vpop.permute.xlu0 %788 }
 0x27b   : > { %v796_v6 = vmul.f32 %v789_v3, %v579_v1 }
 0x27c   : > { %v801_v7 = vadd.f32 %v797_v2, %v785_v0 }
 0x27d   : > { %v800_v9 = vadd.f32 %v796_v6, %v784_v5  ;;  %v945_v10 = vpop.permute.xlu1 %944 }
 0x27e   : > { %v951_v13 = vmul.f32 %v945_v10, %v580_v61  ;;  %v943_v14 = vpop.permute.xlu0 %942 }
 0x27f   : > { %v1596_v16 = vpack.c.bf16 %v801_v7, %v800_v9  ;;  %v950_v17 = vmul.f32 %v943_v14, %v579_v1 }
 0x280   : > { %v955_v19 = vadd.f32 %v951_v13, %v939_v12 }
 0x281   : > { %1624 = vst [vmem:[%s2890_s26 + $0x10] sm:$0xff] %v1596_v16   ;;  %v954_v21 = vadd.f32 %v950_v17, %v938_v15  ;;  %v753_v23 = vpop.permute.xlu1 %752 }
 0x282   : > { %v751_v25 = vpop.permute.xlu0 %750  ;;  %v758_v30 = vmul.f32 %v753_v23, %v581_v22 }
 0x283   : > { %v1606_v27 = vpack.c.bf16 %v955_v19, %v954_v21  ;;  %v757_v28 = vmul.f32 %v751_v25, %v580_v61 }
 0x284   : > { %v762_v47 = vadd.f32 %v758_v30, %v746_v35 }
 0x285   : > { %v761_v34 = vadd.f32 %v757_v28, %v745_v26  ;;  %v755_v36 = vpop.permute.xlu1 %754  ;;  %1607 = vst [vmem:[%s2901_s1] sm:$0xff] %v1606_v27  }
 0x286   : > { %v759_v39 = vmul.f32 %v755_v36, %v582_v29  ;;  %v793_v40 = vpop.permute.xlu0 %792 }
 0x287   : > { %v1586_v42 = vpack.c.bf16 %v761_v34, %v760_v33  ;;  %v798_v49 = vmul.f32 %v793_v40, %v581_v22 }
 0x288   : > { %v763_v48 = vadd.f32 %v759_v39, %v747_v38 }
 0x289   : > { %1587 = vst [vmem:[%s2890_s26] sm:$0xff] %v1586_v42   ;;  %v795_v50 = vpop.permute.xlu1 %794  ;;  %v802_v45 = vadd.f32 %v798_v49, %v786_v51 }
 0x28a   : > { %v1591_v53 = vpack.c.bf16 %v763_v48, %v762_v47  ;;  %v799_v54 = vmul.f32 %v795_v50, %v582_v29  ;;  %v947_v43 = vpop.permute.xlu0 %946 }
 0x28b   : > { %v952_v56 = vmul.f32 %v947_v43, %v581_v22 }
 0x28c   : > { %1623 = vst [vmem:[%s2890_s26 + $0x8] sm:$0xff] %v1591_v53   ;;  %v803_v55 = vadd.f32 %v799_v54, %v787_v52 }
 0x28d   : > { %v949_v57 = vpop.permute.xlu1 %948  ;;  %v956_v44 = vadd.f32 %v952_v56, %v940_v58 }
 0x28e   : > { %v1601_v60 = vpack.c.bf16 %v803_v55, %v802_v45  ;;  %v953_v61 = vmul.f32 %v949_v57, %v582_v29 }
 0x290   : > { %1625 = vst [vmem:[%s2890_s26 + $0x18] sm:$0xff] %v1601_v60   ;;  %v957_v46 = vadd.f32 %v953_v61, %v941_v59 }
 0x292   : > { %v1611_v62 = vpack.c.bf16 %v957_v46, %v956_v44 }
 0x294   : > { %1626 = vst [vmem:[%s2901_s1 + $0x8] sm:$0xff] %v1611_v62  }
 0x295   : > { %s3171_s21 = sld [smem:[#allocation29_spill]]  ;;  %s3172_s30 = sld [smem:[#allocation30_spill]] }
 0x296   : > { %s1153_s6 = sshll.u32 %s2890_s26, 4  ;;  %s3173_s24 = sld [smem:[#allocation45_spill]]  ;;  %s1154_s6 = int_to_ptr.vmem [resolvable:$true] %s1153_s6 }
 0x297   : > { %s2300_s20 = smov 256   ;;  %p3174_p11 = scmp.ne.s32.totalorder %s3142_s14, 0 }
 0x298   : > { %s2301_s25 = smov 1024   ;;  %s2302_s13 = smov 4  }
 0x299   : > { %1700 = sst [smem:[#allocation18]] (%p3174_p11), %s2300_s20  ;;  %s2304_s26 = smov [#allocation17]  }
 0x29a   : > { %1701 = sst [smem:[#allocation18 + $0x1]] (%p3174_p11), %s2301_s25 }
 0x29b   : > { %s1552_s0 = sshll.u32 %s3171_s21, 2  ;;  %s1553_s15 = sshll.u32 %s3172_s30, 5 }
 0x29c   : > { %s1134_s10 = sadd.s32 %s1553_s15, %s1552_s0  ;;  %1702 = sst [smem:[#allocation18 + $0x2]] (%p3174_p11), %s2302_s13 }
 0x29d   : > { %s1554_s19 = sshll.u32 %s1134_s10, 6  ;;  %s2303_s21 = smov 64  }
 0x29e   : > { %s1136_s17 = scalar_lea.hbm %s3173_s24, %s1554_s19  ;;  %1703 = sst [smem:[#allocation18 + $0x3]] (%p3174_p11), %s2303_s21 }
 0x29f   : > { %1704 = sst [smem:[#allocation18 + $0x4]] (%p3174_p11), %s2303_s21  ;;  %s2305_s15 = smov 0  }
 0x2a0   : > { %1705 = sst [smem:[#allocation18 + $0x5]] (%p3174_p11), %s2302_s13  ;;  %s1556_s10 = sshll.u32 %s3172_s30, 4 }
 0x2a1   : > { %1706 = dma.general (%p3174_p11), %s1154_s6, 512, %s1136_s17, %s1112_s7, %s2304_s26, [#allocation18], %s2305_s15, 0  }
 0x2a2   : > { %s1184_s19 = sshll.u32 %s2901_s1, 4  ;;  %s1181_s22 = sadd.s32 %s1556_s10, %s1552_s0  ;;  %s2938_s19 = int_to_ptr.vmem [resolvable:$true] %s1184_s19 }
 0x2a3   : > { %s1557_s23 = sshll.u32 %s1181_s22, 6  ;;  %s3175_s25 = sld [smem:[#allocation46_spill]] }
 0x2a4   : > { %s3176_s7 = sld [smem:[#allocation47_spill]]  ;;  %s2091_s17 = scalar_lea.vmem %s2938_s19, 256 }
 0x2a5   : > { %p2092_p3 = scmp.ne.s32.totalorder %s2938_s19, %s2091_s17  ;;  %s2306_s1 = smov [#allocation14]  }
 0x2a6   : > { %s2095_s30 = sshll.u32 %s2306_s1, 4  ;;  %s2096_s30 = int_to_ptr.vmem [resolvable:$false] %s2095_s30 }
 0x2a7   : > { %p2093_p5 = pnand %p2092_p3, %p3174_p11  ;;  %s2097_s0 = scalar_lea.vmem %s2096_s30, 512 }
 0x2a8   : > { %p2098_p0 = scmp.lt.s32.totalorder %s2938_s19, %s2096_s30  ;;  %p2099_p8 = scmp.lt.s32.totalorder %s2097_s0, %s2091_s17 }
 0x2a9   : > { %s2943_s13 = scalar_lea.hbm %s3175_s25, %s1557_s23  ;;  %p2094_p6 = pneg %p2093_p5 }
 0x2aa   : > { %s2948_s6 = scalar_lea.hbm %s3176_s7, %s1557_s23  ;;  %p2100_p1 = por %p2099_p8, %p2098_p0 }
 0x2ac   : > { %p2101_p7 = pnand %p2100_p1, %p2094_p6 }
 0x2ae   : > { %2104 = shalt.err (!%p2101_p7)
}
 0x2af   : > { %s2105_s11 = scalar_lea.hbm %s2943_s13, 256  ;;  %s2109_s10 = scalar_lea.hbm %s3175_s25, 2048 }
 0x2b0   : > { %p2106_p2 = scmp.ne.s32.totalorder %s2943_s13, %s2105_s11  ;;  %p2110_p13 = scmp.lt.u32.totalorder %s2943_s13, %s3175_s25 }
 0x2b1   : > { %p2111_p4 = scmp.lt.u32.totalorder %s2109_s10, %s2105_s11  ;;  %p2113_p3 = scmp.lt.u32.totalorder %s2105_s11, %s2943_s13 }
 0x2b2   : > { %p2107_p10 = pnand %p2106_p2, %p3174_p11 }
 0x2b3   : > { %p2112_p12 = por %p2111_p4, %p2110_p13 }
 0x2b4   : > { %p2108_p9 = pneg %p2107_p10 }
 0x2b5   : > { %p2114_p5 = por %p2113_p3, %p2112_p12 }
 0x2b7   : > { %p2115_p6 = pnand %p2114_p5, %p2108_p9 }
 0x2b9   : > { %2118 = shalt.err (!%p2115_p6)
}
 0x2ba   : > { %s2307_s24 = smov 4   ;;  %s3177_s20 = smov 64  }
 0x2bb   : > { %s3178_s21 = scalar_lea.sflag [#allocation15], %s2768_s3  ;;  %s1202_s17 = sshll.u32 %s2877_s8, 4  ;;  %s2977_s17 = int_to_ptr.vmem [resolvable:$true] %s1202_s17 }
 0x2bc   : > { %1707 = dma.vmem_to_hbm [thread:$0]  (%p3174_p11), %s2938_s19, 256, %s2943_s13, %s3178_s21, %s3177_s20, %s3177_s20, %s2307_s24  }
 0x2bd   : > { %s2119_s1 = scalar_lea.vmem %s2977_s17, 256  ;;  %s2308_s30 = smov [#allocation16]  }
 0x2be   : > { %p2120_p0 = scmp.ne.s32.totalorder %s2977_s17, %s2119_s1  ;;  %s2123_s0 = sshll.u32 %s2308_s30, 4  ;;  %s2124_s0 = int_to_ptr.vmem [resolvable:$false] %s2123_s0 }
 0x2bf   : > { %s2125_s11 = scalar_lea.vmem %s2124_s0, 512  ;;  %p2126_p7 = scmp.lt.s32.totalorder %s2977_s17, %s2124_s0 }
 0x2c0   : > { %p2121_p8 = pnand %p2120_p0, %p3174_p11  ;;  %p2127_p2 = scmp.lt.s32.totalorder %s2125_s11, %s2119_s1 }
 0x2c2   : > { %p2122_p1 = pneg %p2121_p8  ;;  %p2128_p10 = por %p2127_p2, %p2126_p7 }
 0x2c4   : > { %p2129_p9 = pnand %p2128_p10, %p2122_p1 }
 0x2c6   : > { %2132 = shalt.err (!%p2129_p9)
}
 0x2c7   : > { %s2133_s8 = scalar_lea.hbm %s2948_s6, 256  ;;  %s2137_s26 = scalar_lea.hbm %s3176_s7, 2048 }
 0x2c8   : > { %p2134_p13 = scmp.ne.s32.totalorder %s2948_s6, %s2133_s8  ;;  %p2138_p3 = scmp.lt.u32.totalorder %s2948_s6, %s3176_s7 }
 0x2c9   : > { %p2139_p5 = scmp.lt.u32.totalorder %s2137_s26, %s2133_s8  ;;  %p2141_p0 = scmp.lt.u32.totalorder %s2133_s8, %s2948_s6 }
 0x2ca   : > { %p2135_p4 = pnand %p2134_p13, %p3174_p11 }
 0x2cb   : > { %p2140_p6 = por %p2139_p5, %p2138_p3 }
 0x2cc   : > { %p2136_p12 = pneg %p2135_p4 }
 0x2cd   : > { %p2142_p8 = por %p2141_p0, %p2140_p6 }
 0x2cf   : > { %p2143_p1 = pnand %p2142_p8, %p2136_p12 }
 0x2d1   : > { %2146 = shalt.err (!%p2143_p1)
}
 0x2d2   : > { %s3179_s22 = smov %s3178_s21 }
 0x2d3   : > { %1708 = dma.vmem_to_hbm [thread:$0]  (%p3174_p11), %s2977_s17, 256, %s2948_s6, %s3179_s22, %s3177_s20, %s3177_s20, %s2307_s24  }
 0x2d4 PF: > { %p1742_p7 = scmp.ge.s32.totalorder %s2285_s18, 2  ;;  %s1217_s23 = sand.u32 1, %s2233_s27  }
 0x2d5   : > { %p3180_p2 = scmp.ne.s32.totalorder %s3147_s9, 0  ;;  %s1218_s21 = scalar_lea.sflag [#allocation4], %s1217_s23 }
 0x2d7   : > { %p1732_p10 = pnand %p1742_p7, %p3180_p2 }
 0x2d9   : > { %2224 = dma.done.wait (!%p1732_p10), %s1218_s21, 512  }
 0x2da   : > { %2226 = vsyncadd (!%p1732_p10), %s1218_s21, 4294966784  ;;  %s3181_s14 = sadd.s32 4294967294, %s2285_s18  }
 0x2db   : > { %s1226_s1 = sand.u32 1, %s3181_s14  }
 0x2dc   : > { %s1227_s30 = scalar_lea.sflag [#allocation15], %s1226_s1 }
 0x2dd   : > { %2228 = dma.done.wait (!%p1732_p10), %s1227_s30, 512  }
 0x2de   : > { %2230 = vsyncadd (!%p1732_p10), %s1227_s30, 4294966784  ;;  %s37_s18 = sadd.s32 1, %s2285_s18   ;;  %s3183_s6 = sld [smem:[#allocation39_spill]] }
 0x2df   : > { %p3012_p11 = scmp.ge.s32.totalorder %s37_s18, 10   ;;  %s3184_s30 = sld [smem:[#allocation26_spill]] }
 0x2e0   : > { %s3185_s9 = sld [smem:[#allocation27_spill]]  ;;  %s3186_s10 = sld [smem:[#allocation38_spill]] }
 0x2e1   : > { %s3187_s24 = sld [smem:[#allocation28_spill]]  ;;  %s3188_s13 = sld [smem:[#allocation37_spill]] }
 0x2e2   : > { %s3189_s15 = sld [smem:[#allocation31_spill]]  ;;  %s3190_s20 = sld [smem:[#allocation34_spill]] }
 0x2e3   : > { %s3191_s17 = sld [smem:[#allocation36_spill]]  ;;  %s3192_s27 = smov %s2237_s28 }
 0x2e4   : > { %s3193_s28 = smov %s2241_s29  ;;  %s3194_s29 = smov %s3183_s6 }
 0x2e5   : > { %s3195_s11 = smov %s2261_s12  ;;  %s3197_s14 = smov %s2277_s16 }
 0x2e6   :  { %36 = sbr.rel (!%p3012_p11) target bundleno = 27 (0x1b), region = 188 }
 0x2e7   : > { %s3196_s12 = smov %s3187_s24 }
 0x2e8   : > { %s3198_s16 = smov %s3190_s20 }
 0x2ed   :  { %1241 = vsyncpa [#allocation3], 1 }
 0x2ee   :  { %1243 = vsyncpa [#allocation3 + $0x1], 1 }
 0x2ef   :  { %1244 = vsyncpa [#allocation6], 1 }
 0x2f0   :  { %1246 = vsyncpa [#allocation6 + $0x1], 1 }
 0x2f1   :  { %1247 = vsyncpa [#allocation9], 1 }
 0x2f2   :  { %1249 = vsyncpa [#allocation9 + $0x1], 1 }
 0x2f3   :  { %1250 = vsyncpa [#allocation12], 1 }
 0x2f4   :  { %1252 = vsyncpa [#allocation12 + $0x1], 1 }
 0x2f5   :  { %1253 = vsyncpa [#allocation4], 1 }
 0x2f6   :  { %1255 = vsyncpa [#allocation4 + $0x1], 1 }
 0x2f7   :  { %1256 = vsyncpa [#allocation15], 1 }
 0x2f8   :  { %1258 = vsyncpa [#allocation15 + $0x1], 1 }

</bundles_post_ra>
